<compile_context>
chip_gen: v7x
topology: tpu7x:2x2x1
jax: 0.10.0
libtpu: 0.0.40
codegen_flags: <defaults>
</compile_context>

<pallas_src>
import jax
import jax.numpy as jnp
from jax import lax
from jax.experimental import pallas as pl
from jax.experimental.pallas import tpu as pltpu


def _trunc_normal(key, shape, std=0.01, dtype=jnp.float32):
    # Mirrors torch: x.normal_().fmod_(2).mul_(std).add_(0.0)
    return jnp.fmod(jax.random.normal(key, shape, dtype), 2.0) * std


def _make_kernel(shared_method, d_emb, out_dim, has_shared):
    """Kernel closure for one batch tile.

    idx_ref:    (TB, 1)       int32 indices for this tile
    tab_ref:    (N, d_emb)    full embedding table, resident in VMEM
    shared_ref: (1, out_dim)  shared embedding (already padded for 'concat');
                              absent when has_shared is False
    out_ref:    (TB, out_dim)
    """

    def _gather(idx_ref, tab_ref, tb):
        ids = idx_ref[...]                                   # (TB, 1) int32
        n = tab_ref.shape[0]
        # One-hot gather on the MXU (exact: 0/1 weights, HIGHEST precision).
        onehot = (ids == lax.broadcasted_iota(jnp.int32, (tb, n), 1)).astype(
            tab_ref.dtype
        )
        return jnp.dot(
            onehot,
            tab_ref[...],
            preferred_element_type=jnp.float32,
            precision=lax.Precision.HIGHEST,
        )                                                    # (TB, d_emb) f32

    if not has_shared:
        def kernel_plain(idx_ref, tab_ref, out_ref):
            emb = _gather(idx_ref, tab_ref, out_ref.shape[0])
            out_ref[...] = emb.astype(out_ref.dtype)
        return kernel_plain

    def kernel(idx_ref, tab_ref, shared_ref, out_ref):
        tb = out_ref.shape[0]
        emb = _gather(idx_ref, tab_ref, tb)                  # (TB, d_emb) f32

        if shared_method == "concat":
            # Place emb into lanes [0, d_emb) of an out_dim-wide tile with an
            # exact 0/1 selector matmul (no padded table in HBM, no masked
            # sliced stores); shared vector occupies lanes [d_emb, out_dim).
            sel = (
                lax.broadcasted_iota(jnp.int32, (d_emb, out_dim), 0)
                == lax.broadcasted_iota(jnp.int32, (d_emb, out_dim), 1)
            ).astype(jnp.float32)
            emb = jnp.dot(
                emb,
                sel,
                preferred_element_type=jnp.float32,
                precision=lax.Precision.HIGHEST,
            )                                                # (TB, out_dim)

        # Shared embedding stays resident (constant index_map); one tile-wide
        # broadcast add per grid step.
        out_ref[...] = (emb + shared_ref[...]).astype(out_ref.dtype)

    return kernel


def _pick_batch_tile(batch, n_emb, out_dim, block_b_cap):
    """Rows per grid step: big enough to amortize per-step overhead, small
    enough that the (TB, N) one-hot intermediate stays ~<= 1 MiB of f32."""
    budget_elems = (1 << 20) // 4
    tb = budget_elems // max(n_emb, out_dim, 1)
    tb = max(8, min(block_b_cap, tb))
    tb = (tb // 8) * 8
    if batch <= tb:
        return batch          # full-extent block (no divisibility constraint)
    return tb                 # multiple of 8 -> satisfies sublane constraint


def shared_embedding_fwd(x, embed_table, shared_embed=None, shared_method="add",
                         *, block_b=1024):
    """x: int [B]; embed_table: [N, D_emb]; shared_embed: [1, 1, D_shared] or None.

    Returns [B, 1, out_dim] where out_dim = D_emb ('add' / no shared) or
    D_emb + D_shared ('concat').
    """
    assert shared_method in ("add", "concat")
    B = int(x.shape[0])
    n_emb, d_emb = embed_table.shape
    dt = embed_table.dtype

    has_shared = shared_embed is not None
    if not has_shared:
        method = "add"
        out_dim = d_emb
        operands = ()
        extra_specs = []
    elif shared_method == "add":
        d_shared = shared_embed.shape[-1]
        assert d_shared == d_emb
        method = "add"
        out_dim = d_emb
        shared2d = shared_embed.reshape(1, d_emb).astype(dt)
        operands = (shared2d,)
        extra_specs = [pl.BlockSpec((1, out_dim), lambda i: (0, 0))]
    else:
        d_shared = shared_embed.shape[-1]
        method = "concat"
        out_dim = d_emb + d_shared
        # Pad only the tiny shared vector (zeros over the embedding lanes).
        shared2d = jnp.pad(
            shared_embed.reshape(1, d_shared).astype(dt), ((0, 0), (d_emb, 0))
        )
        operands = (shared2d,)
        extra_specs = [pl.BlockSpec((1, out_dim), lambda i: (0, 0))]

    tb = _pick_batch_tile(B, n_emb, out_dim, block_b)
    grid = (pl.cdiv(B, tb),)

    idx2d = x.astype(jnp.int32).reshape(B, 1)
    kernel = _make_kernel(method, d_emb, out_dim, has_shared)

    # VMEM budget for the resident table (scoped default is 32 MiB on v6e/v7x).
    table_bytes = int(n_emb) * int(d_emb) * embed_table.dtype.itemsize
    vmem_limit = None
    if table_bytes > (12 << 20):
        vmem_limit = int(min(2 * table_bytes + (8 << 20), 60 << 20))

    out2d = pl.pallas_call(
        kernel,
        out_shape=jax.ShapeDtypeStruct((B, out_dim), dt),
        grid=grid,
        in_specs=[
            # Index tile for this grid step.
            pl.BlockSpec((tb, 1), lambda i: (i, 0)),
            # Whole table resident in VMEM (constant block -> fetched once).
            pl.BlockSpec((n_emb, d_emb), lambda i: (0, 0)),
            # Shared embedding resident in VMEM (only when present).
            *extra_specs,
        ],
        out_specs=pl.BlockSpec((tb, out_dim), lambda i: (i, 0)),
        compiler_params=pltpu.CompilerParams(
            dimension_semantics=("parallel",),   # shards across TCs on v7x
            vmem_limit_bytes=vmem_limit,
        ),
    )(idx2d, embed_table, *operands)

    # The PyTorch module returns [B, 1, out_dim]; unsqueeze in the wrapper so
    # the kernel's output stays a dense 2-D slab.
    return out2d[:, None, :]


if __name__ == "__main__":
    key = jax.random.PRNGKey(0)
    k1, k2, k3, k4, kx = jax.random.split(key, 5)

    B = 8
    num_embeddings = 16
    embedding_dim = 32
    shared_embed_div = 8

    x = jax.random.randint(kx, (B,), 0, num_embeddings, dtype=jnp.int32)

    # --- shared_embed=True, shared_method='add' (module default) ---
    table_add = _trunc_normal(k1, (num_embeddings, embedding_dim))
    shared_add = _trunc_normal(k2, (1, 1, embedding_dim))
    out_add = shared_embedding_fwd(x, table_add, shared_add, "add")
    ref_add = table_add[x][:, None, :] + shared_add

    # --- shared_embed=True, shared_method='concat' ---
    d_sh = embedding_dim // shared_embed_div
    table_cc = _trunc_normal(k3, (num_embeddings, embedding_dim - d_sh))
    shared_cc = _trunc_normal(k4, (1, 1, d_sh))
    out_cc = shared_embedding_fwd(x, table_cc, shared_cc, "concat")
    ref_cc = jnp.concatenate(
        [table_cc[x][:, None, :], jnp.broadcast_to(shared_cc, (B, 1, d_sh))],
        axis=-1,
    )

    # --- shared_embed=False ---
    out_none = shared_embedding_fwd(x, table_add, None)
    ref_none = table_add[x][:, None, :]

    jax.block_until_ready((out_add, out_cc, out_none))

    assert out_add.shape == (B, 1, embedding_dim)
    assert out_cc.shape == (B, 1, embedding_dim)
    assert out_none.shape == (B, 1, embedding_dim)
    assert jnp.allclose(out_add, ref_add, atol=1e-5), "add path mismatch"
    assert jnp.allclose(out_cc, ref_cc, atol=1e-5), "concat path mismatch"
    assert jnp.allclose(out_none, ref_none, atol=1e-5), "no-shared path mismatch"

    print("KERNEL_OK")
</pallas_src>

<mosaic_0001>
module attributes {stable_mosaic.version = 11 : i64} {
  func.func @kernel(%arg0: i32, %arg1: memref<8x1xi32, #tpu.memory_space<vmem>>, %arg2: memref<16x32xf32, #tpu.memory_space<vmem>>, %arg3: memref<1x32xf32, #tpu.memory_space<vmem>>, %arg4: memref<8x32xf32, #tpu.memory_space<vmem>>) attributes {dimension_semantics = [#tpu.dimension_semantics<parallel>], iteration_bounds = array<i64: 1>, scalar_prefetch = 0 : i64, scratch_operands = 0 : i64, tpu.core_type = #tpu.core_type<tc>, window_params = [{transform_indices = @transform_0, window_bounds = array<i64: 8, 1>}, {pipeline_mode = #tpu.pipeline_mode<synchronous>, transform_indices = @transform_1, window_bounds = array<i64: 16, 32>}, {pipeline_mode = #tpu.pipeline_mode<synchronous>, transform_indices = @transform_2, window_bounds = array<i64: 1, 32>}, {transform_indices = @transform_3, window_bounds = array<i64: 8, 32>}]} {
    %c0 = arith.constant 0 : index
    %c0_0 = arith.constant 0 : index
    %0 = vector.load %arg1[%c0, %c0_0] : memref<8x1xi32, #tpu.memory_space<vmem>>, vector<8x1xi32>
    %1 = tpu.iota {dimensions = array<i32: 1>} : vector<8x16xi32>
    %2 = vector.broadcast %0 : vector<8x1xi32> to vector<8x16xi32>
    %3 = arith.cmpi eq, %2, %1 : vector<8x16xi32>
    %4 = arith.extui %3 : vector<8x16xi1> to vector<8x16xi32>
    %5 = arith.sitofp %4 : vector<8x16xi32> to vector<8x16xf32>
    %c0_1 = arith.constant 0 : index
    %c0_2 = arith.constant 0 : index
    %6 = vector.load %arg2[%c0_1, %c0_2] : memref<16x32xf32, #tpu.memory_space<vmem>>, vector<16x32xf32>
    %cst = arith.constant dense<0.000000e+00> : vector<8x32xf32>
    %7 = tpu.matmul %5, %6, %cst {dimension_numbers = #tpu.dot_dimension_numbers<[1], [0], [0], [1], [0, 0, 1, 1], [], []>, precision = #tpu.contract_precision<fp32>} : vector<8x16xf32>, vector<16x32xf32>, vector<8x32xf32> -> vector<8x32xf32>
    %c0_3 = arith.constant 0 : index
    %c0_4 = arith.constant 0 : index
    %8 = vector.load %arg3[%c0_3, %c0_4] : memref<1x32xf32, #tpu.memory_space<vmem>>, vector<1x32xf32>
    %9 = vector.broadcast %8 : vector<1x32xf32> to vector<8x32xf32>
    %10 = arith.addf %7, %9 : vector<8x32xf32>
    %c0_5 = arith.constant 0 : index
    %c0_6 = arith.constant 0 : index
    %11 = vector.load %arg4[%c0_5, %c0_6] : memref<8x32xf32, #tpu.memory_space<vmem>>, vector<8x32xf32>
    tpu.vector_store %arg4[%c0_5, %c0_6], %10 {strides = array<i32>} : memref<8x32xf32, #tpu.memory_space<vmem>>, vector<8x32xf32>,
    return
  }
  func.func @transform_0(%arg0: i32) -> (i32, i32) {
    %c0_i32 = arith.constant 0 : i32
    %c0_i32_0 = arith.constant 0 : i32
    return %arg0, %c0_i32 : i32, i32
  }
  func.func @transform_1(%arg0: i32) -> (i32, i32) {
    %c0_i32 = arith.constant 0 : i32
    %c0_i32_0 = arith.constant 0 : i32
    %c0_i32_1 = arith.constant 0 : i32
    return %c0_i32, %c0_i32_0 : i32, i32
  }
  func.func @transform_2(%arg0: i32) -> (i32, i32) {
    %c0_i32 = arith.constant 0 : i32
    %c0_i32_0 = arith.constant 0 : i32
    %c0_i32_1 = arith.constant 0 : i32
    return %c0_i32, %c0_i32_0 : i32, i32
  }
  func.func @transform_3(%arg0: i32) -> (i32, i32) {
    %c0_i32 = arith.constant 0 : i32
    %c0_i32_0 = arith.constant 0 : i32
    return %arg0, %c0_i32 : i32, i32
  }
}

</mosaic_0001>

<bundles_post_ra>
// kernel: tpu_custom_call.1
= control target key start
LH: loop header
LB: loop body
LE: loop exit
PB: predicated region body
PF: predicated region fallthrough
CT: control target
= control target key end

     0   :  { %8 = vsyncpa [#allocation3], 0  ;;  %s745_s0 = inlined_call_operand.vmem [shape: s32[8,1], index: 0, kind: input, shape index: {}]   ;;  %s746_s1 = inlined_call_operand.hbm [shape: f32[16,32], index: 1, kind: input, shape index: {}]   ;;  %s747_s2 = inlined_call_operand.vmem [shape: f32[1,32], index: 2, kind: input, shape index: {}]   ;;  %s748_s3 = inlined_call_operand.hbm [shape: f32[8,32], index: 3, kind: output, shape index: {}]  }
   0x1   :  { %9 = vsyncpa [#allocation4], 0  ;;  %s677_s12 = smov [#allocation2]   ;;  %s629_s16 = scalar_lea.hbm %s746_s1, 256 }
   0x2   :  { %s17_s13 = sshll.u32 %s677_s12, 4  ;;  %p630_p0 = scmp.ne.s32.totalorder %s746_s1, %s629_s16  ;;  %s18_s13 = int_to_ptr.vmem [resolvable:$true] %s17_s13 }
   0x3   :  { %p633_p1 = scmp.lt.u32.totalorder %s629_s16, %s746_s1 }
   0x5   :  { %p635_p2 = pnand %p633_p1, %p630_p0 }
   0x7   :  { %638 = shalt.err (!%p635_p2)
}
   0x8   :  { %s639_s21 = scalar_lea.vmem %s18_s13, 256  ;;  %p644_p4 = scmp.lt.s32.totalorder %s18_s13, %s18_s13 }
   0x9   :  { %p640_p3 = scmp.ne.s32.totalorder %s18_s13, %s639_s21  ;;  %p645_p5 = scmp.lt.s32.totalorder %s639_s21, %s639_s21 }
   0xb   :  { %p646_p6 = por %p645_p5, %p644_p4 }
   0xd   :  { %p647_p7 = pnand %p646_p6, %p640_p3 }
   0xf   :  { %650 = shalt.err (!%p647_p7)
}
  0x10   :  { %s678_s22 = smov 128   ;;  %s679_s23 = smov 8  }
  0x11   :  { %23 = dma.hbm_to_vmem [thread:$0]  %s746_s1, 256, %s18_s13, [#allocation3], %s678_s22, %s678_s22, %s679_s23  }
  0x12   :  { %673 = dma.done.wait [#allocation3], 256  }
  0x13   :  { %674 = vsyncadd [#allocation3], 4294967040  ;;  %v680_v0 = vmov 0   ;;  %v29_v1 = vld [vmem:[%s745_s0] sm:$0xff]  ;;  %v38_v2 = vld [vmem:[#allocation2] sm:$0xff]  ;;  %v681_v7 = vmov 0.0|0.0   ;;  %v30_v20 = vlaneseq }
  0x14   :  { %628 = vset.pattern.permute.xlu0 %v680_v0  ;;  %v39_v3 = vld [vmem:[#allocation2 + $0x8] sm:$0xff]  ;;  %v52_v4 = vand.u32 4294901760, %v38_v2  ;;  %601 = vmatprep.subr.bf16.mxu0 %v681_v7  ;;  %vm682_vm0 = vmmov 0   ;;  %v683_v10 = vmov 0.0   ;;  %vm47_vm1 = vcmask 130048   ;;  %s684_s28 = smov [#allocation5]  }
  0x15   :  { %33 = vperm.xlu0 %628, %v29_v1   ;;  %v55_v5 = vand.u32 4294901760, %v39_v3  ;;  %592 = vmatprep.subr.bf16.mxu1 %v681_v7  ;;  %v31_v21 = vand.u32 127, %v30_v20  ;;  %v528_v31 = vld [vmem:[%s747_s2] ss:$0 sm:$0xff]  ;;  %s518_s29 = sshll.u32 %s684_s28, 4  ;;  %vm510_vm3 = vcmask 261120   ;;  %s519_s29 = int_to_ptr.vmem [resolvable:$true] %s518_s29 }
  0x16   :  { %v130_v8 = vsub.f32 %v38_v2, %v52_v4  ;;  %575 = vmatprep.mubr.msk.f32.mxu0 %vm682_vm0, %v683_v10  ;;  %554 = vmatprep.mubr.msk.f32.mxu1 %vm682_vm0, %v683_v10  ;;  %s651_s30 = scalar_lea.vmem %s519_s29, 128  ;;  %p656_p9 = scmp.lt.s32.totalorder %s519_s29, %s519_s29 }
  0x17   :  { %v593_v6 = vpack.c.bf16 %v55_v5, %v52_v4  ;;  %v137_v9 = vsub.f32 %v39_v3, %v55_v5  ;;  %p652_p8 = scmp.ne.s32.totalorder %s519_s29, %s651_s30  ;;  %p657_p10 = scmp.lt.s32.totalorder %s651_s30, %s651_s30 }
  0x18   :  { %v131_v11 = vand.u32 4294901760, %v130_v8 }
  0x19   :  { %603 = vmatpush3.bf16.msra.mxu0 %v593_v6  ;;  %594 = vmatpush3.bf16.msra.mxu1 %v593_v6  ;;  %v138_v12 = vand.u32 4294901760, %v137_v9  ;;  %v599_v19 = vpack.c.bf16 %v137_v9, %v130_v8  ;;  %p658_p11 = por %p657_p10, %p656_p9 }
  0x1a   :  { %595 = vmatprep.subr.bf16.mxu1 %v681_v7  ;;  %604 = vmatprep.subr.bf16.mxu0 %v681_v7  ;;  %v132_v13 = vsub.f32 %v130_v8, %v131_v11 }
  0x1b   :  { %v139_v14 = vsub.f32 %v137_v9, %v138_v12  ;;  %v605_v15 = vpack.c.bf16 %v138_v12, %v131_v11  ;;  %p659_p12 = pnand %p658_p11, %p652_p8 }
  0x1c   :  { %v133_v16 = vand.u32 4294901760, %v132_v13 }
  0x1d   :  { %v140_v17 = vand.u32 4294901760, %v139_v14 }
  0x1f   :  { %v596_v18 = vpack.c.bf16 %v140_v17, %v133_v16 }
  0x94   :  { %v34_v22 = vpop.permute.xlu0 %33 }
  0x95   :  { %vm35_vm2 = vcmp.eq.s32.totalorder %v34_v22, %v31_v21 }
  0x96   :  { %v527_v23 = vsel %vm35_vm2, 1.0, %v683_v10 }
  0x97   :  { %v49_v24 = vsel %vm47_vm1, %v527_v23, 0 }
  0x98   :  { %v119_v25 = vsub.f32 %v49_v24, %v49_v24 }
  0x9a   :  { %v120_v26 = vand.u32 4294901760, %v119_v25 }
  0x9c   :  { %576 = vmatmul.mubr.f32.vlgmr.msra.gmra.mrb[0].mxu0 %v120_v26  ;;  %v121_v27 = vsub.f32 %v119_v25, %v120_v26 }
  0x9d   :  { %606 = vmatpush3.bf16.msra.mxu0 %v605_v15  ;;  %582 = vmatprep.mubr.msk.f32.mxu0 %vm682_vm0, %v683_v10 }
  0x9e   :  { %v122_v28 = vand.u32 4294901760, %v121_v27  ;;  %607 = vmatprep.subr.bf16.mxu0 %v681_v7 }
  0xa0   :  { %555 = vmatmul.mubr.f32.vlgmr.msra.gmra.mrb[0].mxu1 %v122_v28 }
  0xa1   :  { %597 = vmatpush3.bf16.msra.mxu1 %v596_v18  ;;  %561 = vmatprep.mubr.msk.f32.mxu1 %vm682_vm0, %v683_v10 }
  0xa2   :  { %598 = vmatprep.subr.bf16.mxu1 %v681_v7 }
  0xa4   :  { %583 = vmatmul.mubr.msk.f32.vlgmr.msra.gmra.mrb[0].mxu0 %vm47_vm1, %v527_v23 }
  0xa5   :  { %609 = vmatpush3.bf16.msra.mxu0 %v593_v6  ;;  %589 = vmatprep.mubr.msk.f32.mxu0 %vm682_vm0, %v683_v10 }
  0xa8   :  { %562 = vmatmul.mubr.msk.f32.vlgmr.msra.gmra.mrb[0].mxu1 %vm47_vm1, %v527_v23 }
  0xa9   :  { %600 = vmatpush3.bf16.msra.mxu1 %v599_v19  ;;  %568 = vmatprep.mubr.msk.f32.mxu1 %vm682_vm0, %v683_v10 }
  0xac   :  { %590 = vmatmul.mubr.msk.f32.vlgmr.msra.gmra.mrb[0].mxu0 %vm47_vm1, %v527_v23 }
  0xb0   :  { %569 = vmatmul.mubr.f32.vlgmr.msra.gmra.mrb[0].mxu1 %v119_v25 }
 0x17f   :  { %v506_v29 = vpop.f32.mrb[0].mxu0 }
 0x180   :  { %v591_v30 = vpop.f32.mrb[1].mxu0 }
 0x183   :  { %v281_v32 = vpop.f32.mrb[0].mxu1 }
 0x184   :  { %v610_v33 = vadd.f32 %v528_v31, %v281_v32  ;;  %v570_v34 = vpop.f32.mrb[1].mxu1 }
 0x186   :  { %v611_v35 = vadd.f32 %v610_v33, %v506_v29 }
 0x188   :  { %511 = vst.msk [vmem:[#allocation5] sm:$0xff] %vm510_vm3, %v611_v35 }
 0x189   :  { %662 = shalt.err (!%p659_p12)
}
 0x18a   :  { %s663_s2 = scalar_lea.hbm %s748_s3, 128 }
 0x18b   :  { %p664_p13 = scmp.ne.s32.totalorder %s748_s3, %s663_s2  ;;  %p667_p0 = scmp.lt.u32.totalorder %s663_s2, %s748_s3 }
 0x18d   :  { %p669_p1 = pnand %p667_p0, %p664_p13 }
 0x18f   :  { %672 = shalt.err (!%p669_p1)
}
 0x190   :  { %521 = dma.vmem_to_hbm [thread:$0]  %s519_s29, 128, %s748_s3, [#allocation4]  }
 0x191   :  { %675 = dma.done.wait [#allocation4], 128  }
 0x192   :  { %676 = vsyncadd [#allocation4], 4294967168 }
 0x193   :  { %525 = vsyncpa [#allocation3], 1 }
 0x194   :  { %526 = vsyncpa [#allocation4], 1 }

</bundles_post_ra>
